<compile_context>
chip_gen: v7x
topology: tpu7x:2x2x1
jax: 0.10.0
libtpu: 0.0.40
codegen_flags: <defaults>
</compile_context>

<pallas_src>
import functools

import jax
import jax.numpy as jnp
from jax.experimental import pallas as pl
from jax.experimental.pallas import tpu as pltpu

_LANES = 128
_SUBLANES = 8


def _cdiv(a, b):
    return (a + b - 1) // b


def _round_up(x, m):
    return ((x + m - 1) // m) * m


def _smooth_l1_partial_kernel(pred_ref, gt_ref, out_ref, acc_ref):
    """SmoothL1(beta=1) partial sums; (8,128) VMEM accumulator, flushed at end."""
    j = pl.program_id(1)

    @pl.when(j == 0)
    def _():
        acc_ref[...] = jnp.zeros_like(acc_ref)

    d = pred_ref[...].astype(jnp.float32) - gt_ref[...].astype(jnp.float32)
    ad = jnp.abs(d)
    # SmoothL1 with beta = 1.0 (PyTorch default):
    #   0.5 * d^2   if |d| < 1
    #   |d| - 0.5   otherwise
    elem = jnp.where(ad < 1.0, 0.5 * d * d, ad - 0.5)
    # Fold the (block_rows, 128) tile down to a single (8, 128) vreg-shaped
    # partial with pure VPU adds (no cross-lane reduce in the hot loop).
    acc_ref[...] += jnp.sum(elem.reshape(-1, _SUBLANES, _LANES), axis=0)

    @pl.when(j == pl.num_programs(1) - 1)
    def _():
        out_ref[...] = acc_ref[...].reshape(out_ref.shape)


@functools.partial(jax.jit, static_argnames=("row_tile",))
def smooth_l1_loss_pallas(pred, gt, row_tile=4096):
    """Mean SmoothL1 loss (beta=1) over all elements, hot path in Pallas."""
    assert pred.shape == gt.shape
    n = pred.size

    flat_pred = pred.reshape(-1)
    flat_gt = gt.reshape(-1)

    # Lane-dense layout: rows of 128 elements, row count rounded to sublanes.
    rows = _cdiv(n, _LANES)
    block_rows = min(_round_up(row_tile, _SUBLANES), _round_up(rows, _SUBLANES))
    num_blocks = _cdiv(rows, block_rows)
    # Shard across 2 TensorCores (v7x) when there is more than one block.
    num_slices = 2 if num_blocks >= 2 else 1
    steps = _cdiv(num_blocks, num_slices)
    padded_rows = num_slices * steps * block_rows
    pad = padded_rows * _LANES - n
    if pad:
        flat_pred = jnp.pad(flat_pred, (0, pad))
        flat_gt = jnp.pad(flat_gt, (0, pad))
    pred2 = flat_pred.reshape(padded_rows, _LANES)
    gt2 = flat_gt.reshape(padded_rows, _LANES)

    def in_map(p, j):
        return (p * steps + j, 0)

    itemsize = jnp.dtype(pred.dtype).itemsize
    cost = pl.CostEstimate(
        flops=6 * n,
        transcendentals=0,
        bytes_accessed=2 * padded_rows * _LANES * itemsize
        + num_slices * _SUBLANES * _LANES * 4,
    )

    partials = pl.pallas_call(
        _smooth_l1_partial_kernel,
        out_shape=jax.ShapeDtypeStruct((num_slices, _SUBLANES, _LANES),
                                       jnp.float32),
        grid_spec=pltpu.PrefetchScalarGridSpec(
            num_scalar_prefetch=0,
            grid=(num_slices, steps),
            in_specs=[
                pl.BlockSpec((block_rows, _LANES), in_map),
                pl.BlockSpec((block_rows, _LANES), in_map),
            ],
            out_specs=pl.BlockSpec((1, _SUBLANES, _LANES),
                                   lambda p, j: (p, 0, 0)),
            scratch_shapes=[pltpu.VMEM((_SUBLANES, _LANES), jnp.float32)],
        ),
        compiler_params=pltpu.CompilerParams(
            dimension_semantics=("parallel", "arbitrary"),
            vmem_limit_bytes=32 * 1024 * 1024,
        ),
        cost_estimate=cost,
    )(pred2, gt2)

    # Tiny epilogue: single cross-lane reduce + mean normalization.
    return jnp.sum(partials) / jnp.float32(n)


class MyLoss1StagePallas:
    """JAX/Pallas equivalent of the PyTorch MyLoss1Stage module (forward only)."""

    def __call__(self, x, y, refine):
        global_reduced_pose, contact_probability, velocity, _ = x
        global_reduced_pose_gt, contact_probability_gt, velocity_gt = y
        pose_loss = smooth_l1_loss_pallas(global_reduced_pose,
                                          global_reduced_pose_gt)
        return {"pose": pose_loss}
    # TODO(synk): transB1Loss / transB2Loss are not called by forward();
    # they are intentionally not implemented here.


def _ref_smooth_l1(pred, gt):
    d = pred.astype(jnp.float32) - gt.astype(jnp.float32)
    ad = jnp.abs(d)
    return jnp.mean(jnp.where(ad < 1.0, 0.5 * d * d, ad - 0.5))


if __name__ == "__main__":
    key = jax.random.PRNGKey(0)
    k1, k2, k3, k4, k5, k6, k7, k8, k9 = jax.random.split(key, 9)

    # Small shapes consistent with the forward pass:
    #   global_reduced_pose: (batch=2, seq=8, pose_dim=64)
    B, T, D = 2, 8, 64
    global_reduced_pose = jax.random.normal(k1, (B, T, D), dtype=jnp.float32)
    global_reduced_pose_gt = jax.random.normal(k2, (B, T, D), dtype=jnp.float32)

    contact_probability = jax.nn.sigmoid(jax.random.normal(k3, (B, T, 2)))
    contact_probability_gt = (jax.random.uniform(k4, (B, T, 2)) > 0.5).astype(
        jnp.float32)
    velocity = jax.random.normal(k5, (B, T, 3), dtype=jnp.float32)
    velocity_gt = jax.random.normal(k6, (B, T, 3), dtype=jnp.float32)
    extra = jax.random.normal(k7, (B, T, 3), dtype=jnp.float32)
    refine = None

    x = (global_reduced_pose, contact_probability, velocity, extra)
    y = (global_reduced_pose_gt, contact_probability_gt, velocity_gt)

    loss_fn = MyLoss1StagePallas()
    out = loss_fn(x, y, refine)
    pose_loss = jax.block_until_ready(out["pose"])

    # Cross-check against a pure-JAX reference of SmoothL1 (beta=1, mean).
    ref = jax.block_until_ready(
        _ref_smooth_l1(global_reduced_pose, global_reduced_pose_gt))
    assert abs(float(pose_loss) - float(ref)) < 1e-5, (pose_loss, ref)

    # Extra correctness checks (still tiny):
    # 1) awkward shape exercising the zero-padding / tail path.
    p_odd = jax.random.normal(k8, (3, 7, 50), dtype=jnp.float32)
    g_odd = jax.random.normal(k9, (3, 7, 50), dtype=jnp.float32)
    got_odd = jax.block_until_ready(smooth_l1_loss_pallas(p_odd, g_odd))
    ref_odd = jax.block_until_ready(_ref_smooth_l1(p_odd, g_odd))
    assert abs(float(got_odd) - float(ref_odd)) < 1e-5, (got_odd, ref_odd)

    # 2) small row_tile override exercising the 2-way "parallel" slice split
    #    and multi-step accumulation (grid = (2, 2)).
    p_multi = jax.random.normal(k8, (4, 16, 64), dtype=jnp.float32)
    g_multi = jax.random.normal(k9, (4, 16, 64), dtype=jnp.float32)
    got_multi = jax.block_until_ready(
        smooth_l1_loss_pallas(p_multi, g_multi, row_tile=8))
    ref_multi = jax.block_until_ready(_ref_smooth_l1(p_multi, g_multi))
    assert abs(float(got_multi) - float(ref_multi)) < 1e-5, (got_multi, ref_multi)

    print("KERNEL_OK")
</pallas_src>

<mosaic_0001>
module attributes {stable_mosaic.version = 11 : i64} {
  func.func @_smooth_l1_partial_kernel(%arg0: i32, %arg1: i32, %arg2: memref<8x128xf32, #tpu.memory_space<vmem>>, %arg3: memref<8x128xf32, #tpu.memory_space<vmem>>, %arg4: memref<1x8x128xf32, #tpu.memory_space<vmem>>, %arg5: memref<8x128xf32, #tpu.memory_space<vmem>>) attributes {dimension_semantics = [#tpu.dimension_semantics<parallel>, #tpu.dimension_semantics<arbitrary>], iteration_bounds = array<i64: 1, 1>, scalar_prefetch = 0 : i64, scratch_operands = 1 : i64, tpu.core_type = #tpu.core_type<tc>, window_params = [{transform_indices = @transform_0, window_bounds = array<i64: 8, 128>}, {transform_indices = @transform_1, window_bounds = array<i64: 8, 128>}, {transform_indices = @transform_2, window_bounds = array<i64: 1, 8, 128>}]} {
    %c0_i32 = arith.constant 0 : i32
    %0 = arith.cmpi eq, %arg1, %c0_i32 : i32
    %1 = arith.extui %0 : i1 to i32
    %c0_i32_0 = arith.constant 0 : i32
    %2 = arith.cmpi ne, %1, %c0_i32_0 : i32
    scf.if %2 {
      %cst_13 = arith.constant 0.000000e+00 : f32
      %23 = vector.broadcast %cst_13 : f32 to vector<8x128xf32>
      %c0_14 = arith.constant 0 : index
      %c0_15 = arith.constant 0 : index
      %24 = vector.load %arg5[%c0_14, %c0_15] : memref<8x128xf32, #tpu.memory_space<vmem>>, vector<8x128xf32>
      tpu.vector_store %arg5[%c0_14, %c0_15], %23 {strides = array<i32>} : memref<8x128xf32, #tpu.memory_space<vmem>>, vector<8x128xf32>,
    } else {
    }
    %c0 = arith.constant 0 : index
    %c0_1 = arith.constant 0 : index
    %3 = vector.load %arg2[%c0, %c0_1] : memref<8x128xf32, #tpu.memory_space<vmem>>, vector<8x128xf32>
    %c0_2 = arith.constant 0 : index
    %c0_3 = arith.constant 0 : index
    %4 = vector.load %arg3[%c0_2, %c0_3] : memref<8x128xf32, #tpu.memory_space<vmem>>, vector<8x128xf32>
    %5 = arith.subf %3, %4 : vector<8x128xf32>
    %6 = math.absf %5 : vector<8x128xf32>
    %cst = arith.constant 1.000000e+00 : f32
    %7 = vector.broadcast %cst : f32 to vector<8x128xf32>
    %8 = arith.cmpf olt, %6, %7 : vector<8x128xf32>
    %cst_4 = arith.constant 5.000000e-01 : f32
    %9 = vector.broadcast %cst_4 : f32 to vector<8x128xf32>
    %10 = arith.mulf %9, %5 : vector<8x128xf32>
    %11 = arith.mulf %10, %5 : vector<8x128xf32>
    %cst_5 = arith.constant 5.000000e-01 : f32
    %12 = vector.broadcast %cst_5 : f32 to vector<8x128xf32>
    %13 = arith.subf %6, %12 : vector<8x128xf32>
    %14 = arith.select %8, %11, %13 : vector<8x128xi1>, vector<8x128xf32>
    %c0_6 = arith.constant 0 : index
    %c0_7 = arith.constant 0 : index
    %15 = vector.load %arg5[%c0_6, %c0_7] : memref<8x128xf32, #tpu.memory_space<vmem>>, vector<8x128xf32>
    %16 = vector.shape_cast %14 : vector<8x128xf32> to vector<1x8x128xf32>
    %cst_8 = arith.constant dense<0.000000e+00> : vector<8x128xf32>
    %17 = vector.multi_reduction <add>, %16, %cst_8 [0] : vector<1x8x128xf32> to vector<8x128xf32>
    %18 = arith.addf %15, %17 : vector<8x128xf32>
    %c0_9 = arith.constant 0 : index
    %c0_10 = arith.constant 0 : index
    %19 = vector.load %arg5[%c0_9, %c0_10] : memref<8x128xf32, #tpu.memory_space<vmem>>, vector<8x128xf32>
    tpu.vector_store %arg5[%c0_9, %c0_10], %18 {strides = array<i32>} : memref<8x128xf32, #tpu.memory_space<vmem>>, vector<8x128xf32>,
    %c0_i32_11 = arith.constant 0 : i32
    %20 = arith.cmpi eq, %arg1, %c0_i32_11 : i32
    %21 = arith.extui %20 : i1 to i32
    %c0_i32_12 = arith.constant 0 : i32
    %22 = arith.cmpi ne, %21, %c0_i32_12 : i32
    scf.if %22 {
      %c0_13 = arith.constant 0 : index
      %c0_14 = arith.constant 0 : index
      %23 = vector.load %arg5[%c0_13, %c0_14] : memref<8x128xf32, #tpu.memory_space<vmem>>, vector<8x128xf32>
      %24 = vector.shape_cast %23 : vector<8x128xf32> to vector<1x8x128xf32>
      %c0_15 = arith.constant 0 : index
      %c0_16 = arith.constant 0 : index
      %c0_17 = arith.constant 0 : index
      %25 = vector.load %arg4[%c0_15, %c0_16, %c0_17] : memref<1x8x128xf32, #tpu.memory_space<vmem>>, vector<1x8x128xf32>
      tpu.vector_store %arg4[%c0_15, %c0_16, %c0_17], %24 {strides = array<i32>} : memref<1x8x128xf32, #tpu.memory_space<vmem>>, vector<1x8x128xf32>,
    } else {
    }
    return
  }
  func.func @transform_0(%arg0: i32, %arg1: i32) -> (i32, i32) {
    %c1_i32 = arith.constant 1 : i32
    %0 = arith.muli %arg0, %c1_i32 : i32
    %1 = arith.addi %0, %arg1 : i32
    %c0_i32 = arith.constant 0 : i32
    %c0_i32_0 = arith.constant 0 : i32
    return %1, %c0_i32 : i32, i32
  }
  func.func @transform_1(%arg0: i32, %arg1: i32) -> (i32, i32) {
    %c1_i32 = arith.constant 1 : i32
    %0 = arith.muli %arg0, %c1_i32 : i32
    %1 = arith.addi %0, %arg1 : i32
    %c0_i32 = arith.constant 0 : i32
    %c0_i32_0 = arith.constant 0 : i32
    return %1, %c0_i32 : i32, i32
  }
  func.func @transform_2(%arg0: i32, %arg1: i32) -> (i32, i32, i32) {
    %c0_i32 = arith.constant 0 : i32
    %c0_i32_0 = arith.constant 0 : i32
    %c0_i32_1 = arith.constant 0 : i32
    return %arg0, %c0_i32, %c0_i32_0 : i32, i32, i32
  }
}

</mosaic_0001>

<bundles_post_ra>
// kernel: smooth_l1_loss_pallas.1
= control target key start
LH: loop header
LB: loop body
LE: loop exit
PB: predicated region body
PF: predicated region fallthrough
CT: control target
= control target key end

     0   :  { %s109_s0 = inlined_call_operand.vmem [shape: f32[8,128], index: 0, kind: input, shape index: {}]   ;;  %s110_s1 = inlined_call_operand.vmem [shape: f32[8,128], index: 1, kind: input, shape index: {}]   ;;  %s111_s2 = inlined_call_operand.vmem [shape: f32[1,8,128], index: 2, kind: output, shape index: {}]  }
   0x1   :  { %v50_v0 = vld [vmem:[%s109_s0] sm:$0xff] }
   0x2   :  { %v51_v1 = vld [vmem:[%s110_s1] sm:$0xff] }
   0x3   :  { %v52_v2 = vsub.f32 %v50_v0, %v51_v1 }
   0x5   :  { %v53_v3 = vand.u32 2147483647, %v52_v2  ;;  %v55_v4 = vmul.f32 0.5, %v52_v2 }
   0x7   :  { %vm54_vm0 = vcmp.lt.f32.partialorder %v53_v3, 1.0  ;;  %v56_v5 = vmul.f32 %v55_v4, %v52_v2  ;;  %v84_v6 = vadd.f32 -0.5, %v53_v3 }
   0x9   :  { %v58_v7 = vsel %vm54_vm0, %v56_v5, %v84_v6 }
   0xa   :  { %67 = vst [vmem:[%s111_s2] sm:$0xff] %v58_v7 }

</bundles_post_ra>
